<compile_context>
chip_gen: v6e
topology: v6e:2x2x1
jax: 0.10.0
libtpu: 0.0.40
codegen_flags: <defaults>
</compile_context>

<pallas_src>
import jax
import jax.numpy as jnp
from jax.experimental import pallas as pl
from jax.experimental.pallas import tpu as pltpu


def _round_up(x, m):
    return ((x + m - 1) // m) * m


# ---------------------------------------------------------------------------
# Kernel
# ---------------------------------------------------------------------------
def actor_critic_kernel(x_ref, w1_ref, b1_ref, wh_ref, bh_ref, out_ref):
    # hidden = tanh(x @ W1 + b1): MXU matmul with f32 accumulation, tanh on EUP.
    h = jnp.tanh(
        jnp.dot(x_ref[...], w1_ref[...], preferred_element_type=jnp.float32)
        + b1_ref[...]
    )
    # Fused heads: [logits | value | 0-pad] = h @ [Wa | Wc | 0] + [ba | bc | 0].
    # TODO(synk): for very large `hidden`, chunk this matmul over the hidden axis
    # so the (tb, hidden) f32 `h` scratch does not crowd VMEM on v7x (64 MiB/TC).
    out_ref[...] = (
        jnp.dot(h.astype(wh_ref.dtype), wh_ref[...],
                preferred_element_type=jnp.float32)
        + bh_ref[...]
    ).astype(out_ref.dtype)


# ---------------------------------------------------------------------------
# One-time parameter preprocessing (hoisted out of the per-call forward)
# ---------------------------------------------------------------------------
def prepare_params(params, compute_dtype=jnp.bfloat16):
    """Fuse actor+critic into one zero-padded, lane-dense head and cast streamed
    weights to `compute_dtype`. Returns a dict of arrays only (jit-friendly)."""
    w1, b1 = params["w1"], params["b1"]
    wa, ba = params["wa"], params["ba"]
    wc, bc = params["wc"], params["bc"]
    hidden = w1.shape[1]
    out_dim = wa.shape[1]
    head_out = out_dim + 1                   # logits + value
    head_pad = _round_up(head_out, 128)      # lane-dense output width

    w_heads = jnp.zeros((hidden, head_pad), compute_dtype)
    w_heads = w_heads.at[:, :out_dim].set(wa.astype(compute_dtype))
    w_heads = w_heads.at[:, out_dim:head_out].set(wc.astype(compute_dtype))
    b_heads = jnp.zeros((1, head_pad), jnp.float32)
    b_heads = b_heads.at[:, :out_dim].set(ba.astype(jnp.float32))
    b_heads = b_heads.at[:, out_dim:head_out].set(bc.astype(jnp.float32))

    return {
        "w1": w1.astype(compute_dtype),
        "b1": b1.astype(jnp.float32),   # bias added to f32 accumulator
        "w_heads": w_heads,
        "b_heads": b_heads,
    }


# ---------------------------------------------------------------------------
# Forward
# ---------------------------------------------------------------------------
def actor_critic_forward(x, prepped, *, out_dim, block_b=512,
                         vmem_budget_bytes=48 << 20):
    """x: (B, input_dim). Returns (logits (B, out_dim), value (B, 1)).

    `prepped` must come from `prepare_params` (weights already fused & cast)."""
    w1, b1 = prepped["w1"], prepped["b1"]
    w_heads, b_heads = prepped["w_heads"], prepped["b_heads"]
    compute_dtype = w1.dtype
    out_dtype = compute_dtype            # bf16 path halves output writeback

    B, in_dim = x.shape
    hidden = w1.shape[1]
    head_pad = w_heads.shape[1]
    head_out = out_dim + 1

    cs = jnp.dtype(compute_dtype).itemsize
    os_ = jnp.dtype(out_dtype).itemsize

    # Batch tile: >=2 grid steps whenever possible (v7x megacore sharding),
    # 8-sublane aligned, shrunk until the VMEM footprint fits the budget.
    tb = min(block_b, max(8, _round_up(-(-B // 2), 8)))

    def vmem_bytes(t):
        resident = (in_dim * hidden + hidden * head_pad) * cs + (hidden + head_pad) * 4
        streamed = 2 * t * in_dim * cs + 2 * t * head_pad * os_  # x / out double-buffers
        scratch = t * hidden * 4                                  # f32 `h` intermediate
        return resident + streamed + scratch

    while tb > 8 and vmem_bytes(tb) > vmem_budget_bytes:
        tb = max(8, _round_up(tb // 2, 8))

    grid = (pl.cdiv(B, tb),)   # no jnp.pad: ragged edge block handled by Pallas

    x_c = x if x.dtype == compute_dtype else x.astype(compute_dtype)

    n_rows = grid[0] * tb
    flops = 2 * n_rows * (in_dim * hidden + hidden * head_pad)
    bytes_accessed = (
        cs * B * in_dim + os_ * B * head_pad
        + cs * (in_dim * hidden + hidden * head_pad)
        + 4 * (hidden + head_pad)
    )
    vmem_limit = min(64 << 20, max(32 << 20, int(1.5 * vmem_bytes(tb))))

    out = pl.pallas_call(
        actor_critic_kernel,
        out_shape=jax.ShapeDtypeStruct((B, head_pad), out_dtype),
        grid=grid,
        in_specs=[
            pl.BlockSpec((tb, in_dim), lambda i: (i, 0)),        # x: batch-tiled
            pl.BlockSpec((in_dim, hidden), lambda i: (0, 0)),    # W1: resident
            pl.BlockSpec((1, hidden), lambda i: (0, 0)),         # b1: resident
            pl.BlockSpec((hidden, head_pad), lambda i: (0, 0)),  # fused head W: resident
            pl.BlockSpec((1, head_pad), lambda i: (0, 0)),       # fused head b: resident
        ],
        out_specs=pl.BlockSpec((tb, head_pad), lambda i: (i, 0)),
        compiler_params=pltpu.CompilerParams(
            dimension_semantics=("parallel",),
            vmem_limit_bytes=vmem_limit),
        cost_estimate=pl.CostEstimate(
            flops=flops,
            transcendentals=n_rows * hidden,
            bytes_accessed=bytes_accessed),
    )(x_c, w1, b1, w_heads, b_heads)

    logits = out[:, :out_dim]
    value = out[:, out_dim:head_out]
    return logits, value


# ---------------------------------------------------------------------------
# Init mimicking PyTorch nn.Linear: U(-1/sqrt(fan_in), 1/sqrt(fan_in))
# ---------------------------------------------------------------------------
def init_params(key, input_dim, hidden_dim, output_dim):
    ks = jax.random.split(key, 6)

    def unif(k, shape, fan_in):
        bound = 1.0 / jnp.sqrt(jnp.float32(fan_in))
        return jax.random.uniform(k, shape, jnp.float32, -bound, bound)

    return {
        "w1": unif(ks[0], (input_dim, hidden_dim), input_dim),
        "b1": unif(ks[1], (1, hidden_dim), input_dim),
        "wa": unif(ks[2], (hidden_dim, output_dim), hidden_dim),
        "ba": unif(ks[3], (1, output_dim), hidden_dim),
        "wc": unif(ks[4], (hidden_dim, 1), hidden_dim),
        "bc": unif(ks[5], (1, 1), hidden_dim),
    }


if __name__ == "__main__":
    input_dim, hidden_dim, output_dim = 5, 32, 3
    batch = 8

    key = jax.random.PRNGKey(0)
    k_params, k_x = jax.random.split(key)
    params = init_params(k_params, input_dim, hidden_dim, output_dim)
    x = jax.random.normal(k_x, (batch, input_dim), jnp.float32)

    # Pure-JAX reference.
    h_ref = jnp.tanh(x @ params["w1"] + params["b1"])
    logits_ref = h_ref @ params["wa"] + params["ba"]
    value_ref = h_ref @ params["wc"] + params["bc"]

    fwd = jax.jit(actor_critic_forward, static_argnames=("out_dim", "block_b"))

    # f32 path: exact check against the reference.
    prepped_f32 = prepare_params(params, compute_dtype=jnp.float32)
    logits, value = fwd(x, prepped_f32, out_dim=output_dim)
    jax.block_until_ready((logits, value))
    assert logits.shape == (batch, output_dim) and value.shape == (batch, 1)
    assert jnp.allclose(logits, logits_ref, atol=1e-4)
    assert jnp.allclose(value, value_ref, atol=1e-4)

    # bf16 streaming path (production default): loose tolerance.
    prepped_bf16 = prepare_params(params)  # compute_dtype=bf16
    logits_bf, value_bf = fwd(x, prepped_bf16, out_dim=output_dim)
    jax.block_until_ready((logits_bf, value_bf))
    assert jnp.allclose(logits_bf.astype(jnp.float32), logits_ref,
                        atol=5e-2, rtol=5e-2)
    assert jnp.allclose(value_bf.astype(jnp.float32), value_ref,
                        atol=5e-2, rtol=5e-2)

    print("KERNEL_OK")
</pallas_src>

<mosaic_0001>
module attributes {stable_mosaic.version = 11 : i64} {
  func.func @actor_critic_kernel(%arg0: i32, %arg1: memref<8x5xf32, #tpu.memory_space<vmem>>, %arg2: memref<5x32xf32, #tpu.memory_space<vmem>>, %arg3: memref<1x32xf32, #tpu.memory_space<vmem>>, %arg4: memref<32x128xf32, #tpu.memory_space<vmem>>, %arg5: memref<1x128xf32, #tpu.memory_space<vmem>>, %arg6: memref<8x128xf32, #tpu.memory_space<vmem>>) attributes {dimension_semantics = [#tpu.dimension_semantics<parallel>], iteration_bounds = array<i64: 1>, scalar_prefetch = 0 : i64, scratch_operands = 0 : i64, tpu.core_type = #tpu.core_type<tc>, window_params = [{transform_indices = @transform_0, window_bounds = array<i64: 8, 5>}, {pipeline_mode = #tpu.pipeline_mode<synchronous>, transform_indices = @transform_1, window_bounds = array<i64: 5, 32>}, {pipeline_mode = #tpu.pipeline_mode<synchronous>, transform_indices = @transform_2, window_bounds = array<i64: 1, 32>}, {pipeline_mode = #tpu.pipeline_mode<synchronous>, transform_indices = @transform_3, window_bounds = array<i64: 32, 128>}, {pipeline_mode = #tpu.pipeline_mode<synchronous>, transform_indices = @transform_4, window_bounds = array<i64: 1, 128>}, {transform_indices = @transform_5, window_bounds = array<i64: 8, 128>}]} {
    %c0 = arith.constant 0 : index
    %c0_0 = arith.constant 0 : index
    %0 = vector.load %arg1[%c0, %c0_0] : memref<8x5xf32, #tpu.memory_space<vmem>>, vector<8x5xf32>
    %c0_1 = arith.constant 0 : index
    %c0_2 = arith.constant 0 : index
    %1 = vector.load %arg2[%c0_1, %c0_2] : memref<5x32xf32, #tpu.memory_space<vmem>>, vector<5x32xf32>
    %cst = arith.constant dense<0.000000e+00> : vector<8x32xf32>
    %2 = tpu.matmul %0, %1, %cst {dimension_numbers = #tpu.dot_dimension_numbers<[1], [0], [0], [1], [0, 0, 1, 1], [], []>} : vector<8x5xf32>, vector<5x32xf32>, vector<8x32xf32> -> vector<8x32xf32>
    %c0_3 = arith.constant 0 : index
    %c0_4 = arith.constant 0 : index
    %3 = vector.load %arg3[%c0_3, %c0_4] : memref<1x32xf32, #tpu.memory_space<vmem>>, vector<1x32xf32>
    %4 = vector.broadcast %3 : vector<1x32xf32> to vector<8x32xf32>
    %5 = arith.addf %2, %4 : vector<8x32xf32>
    %6 = math.tanh %5 : vector<8x32xf32>
    %c0_5 = arith.constant 0 : index
    %c0_6 = arith.constant 0 : index
    %7 = vector.load %arg4[%c0_5, %c0_6] : memref<32x128xf32, #tpu.memory_space<vmem>>, vector<32x128xf32>
    %cst_7 = arith.constant dense<0.000000e+00> : vector<8x128xf32>
    %8 = tpu.matmul %6, %7, %cst_7 {dimension_numbers = #tpu.dot_dimension_numbers<[1], [0], [0], [1], [0, 0, 1, 1], [], []>} : vector<8x32xf32>, vector<32x128xf32>, vector<8x128xf32> -> vector<8x128xf32>
    %c0_8 = arith.constant 0 : index
    %c0_9 = arith.constant 0 : index
    %9 = vector.load %arg5[%c0_8, %c0_9] : memref<1x128xf32, #tpu.memory_space<vmem>>, vector<1x128xf32>
    %10 = vector.broadcast %9 : vector<1x128xf32> to vector<8x128xf32>
    %11 = arith.addf %8, %10 : vector<8x128xf32>
    %c0_10 = arith.constant 0 : index
    %c0_11 = arith.constant 0 : index
    %12 = vector.load %arg6[%c0_10, %c0_11] : memref<8x128xf32, #tpu.memory_space<vmem>>, vector<8x128xf32>
    tpu.vector_store %arg6[%c0_10, %c0_11], %11 {strides = array<i32>} : memref<8x128xf32, #tpu.memory_space<vmem>>, vector<8x128xf32>,
    return
  }
  func.func @transform_0(%arg0: i32) -> (i32, i32) {
    %c0_i32 = arith.constant 0 : i32
    %c0_i32_0 = arith.constant 0 : i32
    return %arg0, %c0_i32 : i32, i32
  }
  func.func @transform_1(%arg0: i32) -> (i32, i32) {
    %c0_i32 = arith.constant 0 : i32
    %c0_i32_0 = arith.constant 0 : i32
    %c0_i32_1 = arith.constant 0 : i32
    return %c0_i32, %c0_i32_0 : i32, i32
  }
  func.func @transform_2(%arg0: i32) -> (i32, i32) {
    %c0_i32 = arith.constant 0 : i32
    %c0_i32_0 = arith.constant 0 : i32
    %c0_i32_1 = arith.constant 0 : i32
    return %c0_i32, %c0_i32_0 : i32, i32
  }
  func.func @transform_3(%arg0: i32) -> (i32, i32) {
    %c0_i32 = arith.constant 0 : i32
    %c0_i32_0 = arith.constant 0 : i32
    %c0_i32_1 = arith.constant 0 : i32
    return %c0_i32, %c0_i32_0 : i32, i32
  }
  func.func @transform_4(%arg0: i32) -> (i32, i32) {
    %c0_i32 = arith.constant 0 : i32
    %c0_i32_0 = arith.constant 0 : i32
    %c0_i32_1 = arith.constant 0 : i32
    return %c0_i32, %c0_i32_0 : i32, i32
  }
  func.func @transform_5(%arg0: i32) -> (i32, i32) {
    %c0_i32 = arith.constant 0 : i32
    %c0_i32_0 = arith.constant 0 : i32
    return %arg0, %c0_i32 : i32, i32
  }
}

</mosaic_0001>

<bundles_post_ra>
// kernel: actor_critic_forward.1
= control target key start
LH: loop header
LB: loop body
LE: loop exit
PB: predicated region body
PF: predicated region fallthrough
CT: control target
= control target key end

     0   :  { %10 = vsyncpa [#allocation3], 0  ;;  %s393_s0 = inlined_call_operand.hbm [shape: f32[8,5], index: 0, kind: input, shape index: {}]   ;;  %s394_s1 = inlined_call_operand.hbm [shape: f32[5,32], index: 1, kind: input, shape index: {}]   ;;  %s395_s2 = inlined_call_operand.vmem [shape: f32[1,32], index: 2, kind: input, shape index: {}]   ;;  %s396_s3 = inlined_call_operand.hbm [shape: f32[32,128], index: 3, kind: input, shape index: {}]   ;;  %s397_s4 = inlined_call_operand.vmem [shape: f32[1,128], index: 4, kind: input, shape index: {}]   ;;  %s398_s5 = inlined_call_operand.vmem [shape: f32[8,128], index: 5, kind: output, shape index: {}]  }
   0x1   :  { %11 = vsyncpa [#allocation5], 0  ;;  %s338_s18 = smov [#allocation4]   ;;  %s339_s20 = smov [#allocation2]  }
   0x2   :  { %s28_s19 = sshll.u32 %s338_s18, 4  ;;  %s18_s21 = sshll.u32 %s339_s20, 4  ;;  %s29_s19 = int_to_ptr.vmem [resolvable:$true] %s28_s19  ;;  %s19_s21 = int_to_ptr.vmem [resolvable:$true] %s18_s21 }
   0x3   :  { %s282_s22 = scalar_lea.vmem %s29_s19, 128  ;;  %p287_p1 = scmp.lt.s32.totalorder %s29_s19, %s29_s19 }
   0x4   :  { %p283_p0 = scmp.ne.s32.totalorder %s29_s19, %s282_s22  ;;  %p288_p2 = scmp.lt.s32.totalorder %s282_s22, %s282_s22 }
   0x6   :  { %p289_p3 = por %p288_p2, %p287_p1 }
   0x8   :  { %p290_p4 = pnand %p289_p3, %p283_p0 }
   0xa   :  { %293 = shalt.err (!%p290_p4)
}
   0xb   :  { %31 = dma.hbm_to_vmem [thread:$0]  %s394_s1, 128, %s29_s19, [#allocation5]  }
   0xc   :  { %s302_s25 = scalar_lea.vmem %s19_s21, 128  ;;  %p307_p6 = scmp.lt.s32.totalorder %s19_s21, %s19_s21 }
   0xd   :  { %p303_p5 = scmp.ne.s32.totalorder %s19_s21, %s302_s25  ;;  %p308_p7 = scmp.lt.s32.totalorder %s302_s25, %s302_s25 }
   0xf   :  { %p309_p8 = por %p308_p7, %p307_p6 }
  0x11   :  { %p310_p9 = pnand %p309_p8, %p303_p5 }
  0x13   :  { %313 = shalt.err (!%p310_p9)
}
  0x14   :  { %21 = dma.hbm_to_vmem [thread:$0]  %s393_s0, 128, %s19_s21, [#allocation3]  }
  0x15   :  { %s340_s28 = smov [#allocation6]  }
  0x16   :  { %s39_s29 = sshll.u32 %s340_s28, 4  ;;  %s40_s29 = int_to_ptr.vmem [resolvable:$true] %s39_s29 }
  0x17   :  { %s322_s30 = scalar_lea.vmem %s40_s29, 512  ;;  %p327_p11 = scmp.lt.s32.totalorder %s40_s29, %s40_s29 }
  0x18   :  { %p323_p10 = scmp.ne.s32.totalorder %s40_s29, %s322_s30  ;;  %p328_p12 = scmp.lt.s32.totalorder %s322_s30, %s322_s30 }
  0x1a   :  { %p329_p13 = por %p328_p12, %p327_p11 }
  0x1c   :  { %p330_p0 = pnand %p329_p13, %p323_p10 }
  0x1e   :  { %333 = shalt.err (!%p330_p0)
}
  0x1f   :  { %s341_s1 = smov 128   ;;  %s342_s6 = smov 8  }
  0x20   :  { %45 = dma.hbm_to_vmem [thread:$0]  %s396_s3, 512, %s40_s29, [#allocation5], %s341_s1, %s341_s1, %s342_s6  }
  0x21   :  { %334 = dma.done.wait [#allocation3], 128  }
  0x22   :  { %335 = vsyncadd [#allocation3], 4294967168 }
  0x23   :  { %336 = dma.done.wait [#allocation5], 640  }
  0x24   :  { %337 = vsyncadd [#allocation5], 4294966656  ;;  %v343_v0 = vmov 0.0   ;;  %vm344_vm0 = vmmov 0   ;;  %vm70_vm1 = vcmask 1044480   ;;  %vm66_vm2 = vcmask 39936  }
  0x25   :  { %249 = vmatprep.subr.mxu0 %v343_v0  ;;  %251 = vmatprep.mubr.msk.f32.mxu0 %vm344_vm0, %v343_v0  ;;  %v58_v1 = vld [vmem:[#allocation4] sm:$0x1f]  ;;  %v57_v2 = vld [vmem:[#allocation2] sm:$0xff]  ;;  %v146_v5 = vld [vmem:[#allocation6 + $0x8] sm:$0xff]  ;;  %vm156_vm3 = vcmask 261120  }
  0x26   :  { %254 = vmatprep.subr.mxu1 %v343_v0  ;;  %262 = vmatprep.mubr.msk.f32.mxu1 %vm344_vm0, %v343_v0  ;;  %v148_v3 = vld [vmem:[#allocation6 + $0x18] sm:$0xff]  ;;  %v147_v4 = vld [vmem:[#allocation6 + $0x10] sm:$0xff]  ;;  %v145_v6 = vld [vmem:[#allocation6] sm:$0xff] }
  0x27   :  { %250 = vmatpush3.msk.msra.mxu0 %vm70_vm1, %v58_v1  ;;  %255 = vmatpush3.msra.mxu1 %v148_v3  ;;  %v237_v7 = vld [vmem:[%s395_s2] ss:$0 sm:$0xff] }
  0x28   :  { %252 = vmatmul.mubr.msk.f32.vlgmr.msra.gmra.mxu0 %vm66_vm2, %v57_v2  ;;  %256 = vmatprep.subr.mxu1 %v343_v0  ;;  %v240_v12 = vld [vmem:[%s397_s4] ss:$0 sm:$0xff] }
  0x29   :  { %257 = vmatpush3.msra.mxu1 %v147_v4 }
  0x2a   :  { %258 = vmatprep.subr.mxu1 %v343_v0 }
  0x2b   :  { %259 = vmatpush3.msra.mxu1 %v146_v5 }
  0x2c   :  { %260 = vmatprep.subr.mxu1 %v343_v0 }
  0x2d   :  { %261 = vmatpush3.msra.mxu1 %v145_v6 }
  0xe8   :  { %v140_v8 = vpop.f32.mrf.mxu0 }
  0xe9   :  { %v141_v9 = vadd.f32 %v237_v7, %v140_v8 }
  0xea   :  { %v253_v10 = vpop.f32.mrf.mxu0 }
  0xeb   :  { %272 = vtanh.f32 %v141_v9 }
  0xf8   :  { %v273_v11 = vpop.eup %272 }
  0xf9   :  { %263 = vmatmul.mubr.msk.f32.vlgmr.msra.gmra.mxu1 %vm156_vm3, %v273_v11 }
 0x1b9   :  { %v226_v13 = vpop.f32.mrf.mxu1 }
 0x1ba   :  { %v227_v14 = vadd.f32 %v240_v12, %v226_v13 }
 0x1bb   :  { %v264_v15 = vpop.f32.mrf.mxu1 }
 0x1bc   :  { %230 = vst [vmem:[%s398_s5] sm:$0xff] %v227_v14 }
 0x1bd   :  { %235 = vsyncpa [#allocation3], 1 }
 0x1be   :  { %236 = vsyncpa [#allocation5], 1 }

</bundles_post_ra>
